<compile_context>
chip_gen: v5e
topology: v5e:2x2
jax: 0.10.0
libtpu: 0.0.40
codegen_flags: <defaults>
</compile_context>

<pallas_src>
import functools

import numpy as np
import jax
import jax.numpy as jnp
from jax import lax
from jax.experimental import pallas as pl
from jax.experimental.pallas import tpu as pltpu

# ------------------------------------------------------------------ constants
_CLIP_IDXS_SIGNS = np.array(
    [(1, 0, 1), (2, 0, 1), (3, 0, -1), (4, 0, -1), (5, 0, -1), (6, 0, -1),
     (7, 0, -1), (8, 0, -1), (9, 0, -1), (12, 0, -1), (13, 1, 1), (14, 1, -1),
     (16, 1, 1), (17, 1, -1), (18, 1, 1), (19, 1, -1)], dtype=np.int32)

_ZERO_IDXS = np.array(
    [(10, 0), (10, 1), (10, 2), (11, 0), (11, 1), (11, 2),
     (15, 0), (15, 1), (15, 2), (20, 1), (21, 1)], dtype=np.int32)


def _round_up(x: int, m: int) -> int:
    return ((x + m - 1) // m) * m


@functools.lru_cache(maxsize=None)
def _masks(with_pelvis: bool, pack: int):
    """(1, pack*D) masks for contrib = m1*x + m2*|x| (== 2x the target)."""
    cdata = _CLIP_IDXS_SIGNS.copy()
    zdata = _ZERO_IDXS.copy()
    if not with_pelvis:
        cdata[:, 0] -= 1
        zdata[:, 0] -= 1
        d = 21 * 3
    else:
        d = 22 * 3
    cidxs = cdata[:, 0] * 3 + cdata[:, 1]
    csigns = cdata[:, 2].astype(np.float32)
    zidxs = zdata[:, 0] * 3 + zdata[:, 1]

    # The fused formula requires disjoint clip / zero index sets.
    assert len(set(cidxs.tolist()) & set(zidxs.tolist())) == 0

    m1 = np.zeros((1, d), dtype=np.float32)
    m2 = np.zeros((1, d), dtype=np.float32)
    m1[0, cidxs] = csigns     # clip cols: sign*x + |x| == 2*relu(sign*x)
    m2[0, cidxs] = 1.0
    m2[0, zidxs] = 2.0        # zero cols: 2*|x|
    m1 = np.tile(m1, (1, pack))
    m2 = np.tile(m2, (1, pack))
    n_sel = int(len(cidxs) + len(zidxs))   # 27 selected elements per logical row
    return jnp.asarray(m1), jnp.asarray(m2), n_sel


# ------------------------------------------------------------------ kernel
def _angle_prior_kernel(pose_ref, m1_ref, m2_ref, out_ref, acc_ref, *,
                        inner, tile_rows, rows_valid, inv_n, needs_mask):
    c = pl.program_id(0)                    # core (parallel axis)
    i = pl.program_id(1)                    # row-tile within this core
    t = c * inner + i                       # global row-tile index (may overshoot)

    @pl.when(i == 0)
    def _init():
        acc_ref[...] = jnp.zeros_like(acc_ref)

    x = pose_ref[...].astype(jnp.float32)                    # (TR, W), VPU-only path
    contrib = x * m1_ref[...] + jnp.abs(x) * m2_ref[...]     # 2x target per element

    def _accumulate(vals):
        # Lane-shaped partial sums; cross-lane reduce deferred to finalize.
        acc_ref[...] += jnp.sum(vals, axis=0, keepdims=True)

    if needs_mask:
        is_edge = (t + 1) * tile_rows > rows_valid            # tile overruns valid rows

        @pl.when(jnp.logical_not(is_edge))
        def _full_tile():
            _accumulate(contrib)

        @pl.when(is_edge)
        def _edge_tile():
            row = lax.broadcasted_iota(jnp.int32, contrib.shape, 0) + t * tile_rows
            _accumulate(jnp.where(row < rows_valid, contrib, 0.0))
    else:
        _accumulate(contrib)

    @pl.when(i == pl.num_programs(1) - 1)
    def _finalize():
        # One cross-lane reduce per core; 0.5 (from the 2x formula) and 1/(B*27)
        # are folded into inv_n, precomputed in Python.
        total = jnp.sum(acc_ref[...]) * jnp.float32(inv_n)
        out_ref[...] = jnp.full(out_ref.shape, total, dtype=jnp.float32)


# ------------------------------------------------------------------ wrapper
def smplx_angle_prior(pose: jax.Array, with_pelvis: bool = False,
                      tile_rows: int | None = None) -> jax.Array:
    assert pose.ndim == 2
    d = 22 * 3 if with_pelvis else 21 * 3
    assert pose.shape[1] == d
    B = pose.shape[0]
    assert B >= 1

    # Keep bf16 in HBM (halves DMA for this memory-bound kernel); upcast in-kernel.
    if pose.dtype not in (jnp.float32, jnp.bfloat16):
        pose = pose.astype(jnp.float32)

    # Lane packing: two logical rows per VMEM row when they fit in 128 lanes
    # (D=63 -> 126/128 lanes).  The reshape of a contiguous row-major array is
    # free in XLA.  Odd B / D=66 use the unpacked layout.
    pack = 2 if (B % 2 == 0 and 2 * d <= 128) else 1
    R = B // pack                      # packed rows (exact)
    W = d * pack                       # packed row width
    packed = pose.reshape(R, W)

    m1, m2, n_sel = _masks(bool(with_pelvis), pack)

    if tile_rows is None:
        tile_rows = min(4096, _round_up(R, 8))     # 4096 packed = 8192 logical rows
    else:
        tile_rows = max(8, _round_up(int(tile_rows), 8))

    nvt = pl.cdiv(R, tile_rows)            # number of valid row tiles
    ncores = 2 if nvt >= 2 else 1          # megacore split; no-op on 1-TC chips
    inner = pl.cdiv(nvt, ncores)
    needs_mask = (ncores * inner * tile_rows != R)
    inv_n = 0.5 / float(B * n_sel)         # 0.5 folds the 2x contrib formula

    kernel = functools.partial(
        _angle_prior_kernel, inner=inner, tile_rows=tile_rows,
        rows_valid=R, inv_n=inv_n, needs_mask=needs_mask)

    # Double-buffered pose tile dominates VMEM; raise the scoped limit only
    # when a user-chosen tile actually needs it (v5e default is 16 MiB).
    lane_w = _round_up(W, 128)
    vmem_est = 2 * tile_rows * lane_w * packed.dtype.itemsize + (1 << 20)
    cparams = {"dimension_semantics": ("parallel", "arbitrary")}
    if vmem_est > 12 * 1024 * 1024:
        cparams["vmem_limit_bytes"] = min(int(vmem_est) + (8 << 20), 112 << 20)

    out = pl.pallas_call(
        kernel,
        out_shape=jax.ShapeDtypeStruct((ncores, 8, 128), jnp.float32),
        grid_spec=pltpu.PrefetchScalarGridSpec(
            num_scalar_prefetch=0,
            grid=(ncores, inner),
            in_specs=[
                # Pose tile (pipelined).  Clamp over-scheduled tiles to the last
                # valid block so the DMA never walks off the array; their
                # contribution is masked to zero in the kernel.
                pl.BlockSpec((tile_rows, W),
                             lambda c, i: (jnp.minimum(c * inner + i, nvt - 1), 0)),
                pl.BlockSpec((1, W), lambda c, i: (0, 0)),   # m1 (VMEM-resident)
                pl.BlockSpec((1, W), lambda c, i: (0, 0)),   # m2 (VMEM-resident)
            ],
            out_specs=pl.BlockSpec((1, 8, 128), lambda c, i: (c, 0, 0)),
            scratch_shapes=[pltpu.VMEM((1, W), jnp.float32)],
        ),
        compiler_params=pltpu.CompilerParams(**cparams),
    )(packed, m1, m2)

    # Per-core partial means; sum them (each block is a splat of its partial).
    return jnp.sum(out[:, 0, 0])


# ------------------------------------------------------------------ reference
def _reference(pose: jax.Array, with_pelvis: bool = False) -> jax.Array:
    cdata = _CLIP_IDXS_SIGNS.copy()
    zdata = _ZERO_IDXS.copy()
    if not with_pelvis:
        cdata[:, 0] -= 1
        zdata[:, 0] -= 1
    cidxs = cdata[:, 0] * 3 + cdata[:, 1]
    csigns = jnp.asarray(cdata[:, 2], dtype=pose.dtype)
    zidxs = zdata[:, 0] * 3 + zdata[:, 1]
    cres = jax.nn.relu(pose[:, cidxs] * csigns[None, :])
    zres = jnp.abs(pose[:, zidxs])
    return jnp.mean(jnp.concatenate((cres, zres), axis=1))


if __name__ == "__main__":
    key = jax.random.PRNGKey(0)

    def _check(got, want, name, rtol=1e-5, atol=1e-6):
        got = jax.block_until_ready(got)
        want = jax.block_until_ready(want)
        assert jnp.allclose(got, want, rtol=rtol, atol=atol), (name, got, want)

    # 1) Small even batch (packed layout, single masked tile).
    pose = jax.random.normal(key, (4, 21 * 3), dtype=jnp.float32)
    _check(smplx_angle_prior(pose), _reference(pose), "b4")

    # 2) Multi-tile + two-core split + edge tile (B=20 packed -> 10 rows, tile 8).
    pose2 = jax.random.normal(jax.random.PRNGKey(1), (20, 21 * 3), jnp.float32)
    _check(smplx_angle_prior(pose2, tile_rows=8), _reference(pose2), "b20")

    # 3) Odd batch (unpacked fallback, single masked tile).
    pose3 = jax.random.normal(jax.random.PRNGKey(2), (7, 21 * 3), jnp.float32)
    _check(smplx_angle_prior(pose3), _reference(pose3), "b7")

    # 4) with_pelvis (D=66, unpacked layout).
    pose4 = jax.random.normal(jax.random.PRNGKey(3), (6, 22 * 3), jnp.float32)
    _check(smplx_angle_prior(pose4, with_pelvis=True),
           _reference(pose4, with_pelvis=True), "pelvis")

    # 5) bf16 input stays bf16 in HBM; reduction runs in f32 (documented delta
    #    vs a pure-bf16 torch reduction).
    pose5 = jax.random.normal(jax.random.PRNGKey(4), (16, 21 * 3),
                              jnp.float32).astype(jnp.bfloat16)
    _check(smplx_angle_prior(pose5),
           _reference(pose5.astype(jnp.float32)), "bf16", rtol=1e-5, atol=1e-5)

    print("KERNEL_OK")
</pallas_src>

<mosaic_0001>
module attributes {stable_mosaic.version = 11 : i64} {
  func.func @_angle_prior_kernel(%arg0: i32, %arg1: i32, %arg2: memref<8x126xf32, #tpu.memory_space<vmem>>, %arg3: memref<1x126xf32, #tpu.memory_space<vmem>>, %arg4: memref<1x126xf32, #tpu.memory_space<vmem>>, %arg5: memref<1x8x128xf32, #tpu.memory_space<vmem>>, %arg6: memref<1x126xf32, #tpu.memory_space<vmem>>) attributes {dimension_semantics = [#tpu.dimension_semantics<parallel>, #tpu.dimension_semantics<arbitrary>], iteration_bounds = array<i64: 1, 1>, scalar_prefetch = 0 : i64, scratch_operands = 1 : i64, tpu.core_type = #tpu.core_type<tc>, window_params = [{transform_indices = @transform_0, window_bounds = array<i64: 8, 126>}, {pipeline_mode = #tpu.pipeline_mode<synchronous>, transform_indices = @transform_1, window_bounds = array<i64: 1, 126>}, {pipeline_mode = #tpu.pipeline_mode<synchronous>, transform_indices = @transform_2, window_bounds = array<i64: 1, 126>}, {transform_indices = @transform_3, window_bounds = array<i64: 1, 8, 128>}]} {
    %c1_i32 = arith.constant 1 : i32
    %0 = arith.muli %arg0, %c1_i32 : i32
    %1 = arith.addi %0, %arg1 : i32
    %c0_i32 = arith.constant 0 : i32
    %2 = arith.cmpi eq, %arg1, %c0_i32 : i32
    %3 = arith.extui %2 : i1 to i32
    %c0_i32_0 = arith.constant 0 : i32
    %4 = arith.cmpi ne, %3, %c0_i32_0 : i32
    scf.if %4 {
      %cst = arith.constant 0.000000e+00 : f32
      %25 = vector.broadcast %cst : f32 to vector<1x126xf32>
      %c0_11 = arith.constant 0 : index
      %c0_12 = arith.constant 0 : index
      %26 = vector.load %arg6[%c0_11, %c0_12] : memref<1x126xf32, #tpu.memory_space<vmem>>, vector<1x126xf32>
      tpu.vector_store %arg6[%c0_11, %c0_12], %25 {strides = array<i32>} : memref<1x126xf32, #tpu.memory_space<vmem>>, vector<1x126xf32>,
    } else {
    }
    %c0 = arith.constant 0 : index
    %c0_1 = arith.constant 0 : index
    %5 = vector.load %arg2[%c0, %c0_1] : memref<8x126xf32, #tpu.memory_space<vmem>>, vector<8x126xf32>
    %c0_2 = arith.constant 0 : index
    %c0_3 = arith.constant 0 : index
    %6 = vector.load %arg3[%c0_2, %c0_3] : memref<1x126xf32, #tpu.memory_space<vmem>>, vector<1x126xf32>
    %7 = vector.broadcast %6 : vector<1x126xf32> to vector<8x126xf32>
    %8 = arith.mulf %5, %7 : vector<8x126xf32>
    %9 = math.absf %5 : vector<8x126xf32>
    %c0_4 = arith.constant 0 : index
    %c0_5 = arith.constant 0 : index
    %10 = vector.load %arg4[%c0_4, %c0_5] : memref<1x126xf32, #tpu.memory_space<vmem>>, vector<1x126xf32>
    %11 = vector.broadcast %10 : vector<1x126xf32> to vector<8x126xf32>
    %12 = arith.mulf %9, %11 : vector<8x126xf32>
    %13 = arith.addf %8, %12 : vector<8x126xf32>
    %c1_i32_6 = arith.constant 1 : i32
    %14 = arith.addi %1, %c1_i32_6 : i32
    %c8_i32 = arith.constant 8 : i32
    %15 = arith.muli %14, %c8_i32 : i32
    %c2_i32 = arith.constant 2 : i32
    %16 = arith.cmpi sgt, %15, %c2_i32 : i32
    %true = arith.constant true
    %17 = arith.xori %16, %true : i1
    %18 = arith.extui %17 : i1 to i32
    %c0_i32_7 = arith.constant 0 : i32
    %19 = arith.cmpi ne, %18, %c0_i32_7 : i32
    scf.if %19 {
      %c0_11 = arith.constant 0 : index
      %c0_12 = arith.constant 0 : index
      %25 = vector.load %arg6[%c0_11, %c0_12] : memref<1x126xf32, #tpu.memory_space<vmem>>, vector<1x126xf32>
      %cst = arith.constant dense<0.000000e+00> : vector<126xf32>
      %26 = vector.multi_reduction <add>, %13, %cst [0] : vector<8x126xf32> to vector<126xf32>
      %27 = vector.shape_cast %26 : vector<126xf32> to vector<1x126xf32>
      %28 = arith.addf %25, %27 : vector<1x126xf32>
      %c0_13 = arith.constant 0 : index
      %c0_14 = arith.constant 0 : index
      %29 = vector.load %arg6[%c0_13, %c0_14] : memref<1x126xf32, #tpu.memory_space<vmem>>, vector<1x126xf32>
      tpu.vector_store %arg6[%c0_13, %c0_14], %28 {strides = array<i32>} : memref<1x126xf32, #tpu.memory_space<vmem>>, vector<1x126xf32>,
    } else {
    }
    %20 = arith.extui %16 : i1 to i32
    %c0_i32_8 = arith.constant 0 : i32
    %21 = arith.cmpi ne, %20, %c0_i32_8 : i32
    scf.if %21 {
      %25 = tpu.iota {dimensions = array<i32: 0>} : vector<8x126xi32>
      %c8_i32_11 = arith.constant 8 : i32
      %26 = arith.muli %1, %c8_i32_11 : i32
      %27 = vector.broadcast %26 : i32 to vector<8x126xi32>
      %28 = arith.addi %25, %27 : vector<8x126xi32>
      %c2_i32_12 = arith.constant 2 : i32
      %29 = vector.broadcast %c2_i32_12 : i32 to vector<8x126xi32>
      %30 = arith.cmpi slt, %28, %29 : vector<8x126xi32>
      %cst = arith.constant 0.000000e+00 : f32
      %31 = vector.broadcast %cst : f32 to vector<8x126xf32>
      %32 = arith.select %30, %13, %31 : vector<8x126xi1>, vector<8x126xf32>
      %c0_13 = arith.constant 0 : index
      %c0_14 = arith.constant 0 : index
      %33 = vector.load %arg6[%c0_13, %c0_14] : memref<1x126xf32, #tpu.memory_space<vmem>>, vector<1x126xf32>
      %cst_15 = arith.constant dense<0.000000e+00> : vector<126xf32>
      %34 = vector.multi_reduction <add>, %32, %cst_15 [0] : vector<8x126xf32> to vector<126xf32>
      %35 = vector.shape_cast %34 : vector<126xf32> to vector<1x126xf32>
      %36 = arith.addf %33, %35 : vector<1x126xf32>
      %c0_16 = arith.constant 0 : index
      %c0_17 = arith.constant 0 : index
      %37 = vector.load %arg6[%c0_16, %c0_17] : memref<1x126xf32, #tpu.memory_space<vmem>>, vector<1x126xf32>
      tpu.vector_store %arg6[%c0_16, %c0_17], %36 {strides = array<i32>} : memref<1x126xf32, #tpu.memory_space<vmem>>, vector<1x126xf32>,
    } else {
    }
    %c0_i32_9 = arith.constant 0 : i32
    %22 = arith.cmpi eq, %arg1, %c0_i32_9 : i32
    %23 = arith.extui %22 : i1 to i32
    %c0_i32_10 = arith.constant 0 : i32
    %24 = arith.cmpi ne, %23, %c0_i32_10 : i32
    scf.if %24 {
      %c0_11 = arith.constant 0 : index
      %c0_12 = arith.constant 0 : index
      %25 = vector.load %arg6[%c0_11, %c0_12] : memref<1x126xf32, #tpu.memory_space<vmem>>, vector<1x126xf32>
      %26 = vector.shape_cast %25 : vector<1x126xf32> to vector<1x1x126xf32>
      %cst = arith.constant dense<0.000000e+00> : vector<1xf32>
      %27 = vector.multi_reduction <add>, %26, %cst [1, 2] : vector<1x1x126xf32> to vector<1xf32>
      %28 = vector.shape_cast %27 : vector<1xf32> to vector<1x1x1xf32>
      %29 = vector.extract %28[0, 0, 0] : f32 from vector<1x1x1xf32>
      %cst_13 = arith.constant 0.00462962966 : f32
      %30 = arith.mulf %29, %cst_13 : f32
      %31 = vector.broadcast %30 : f32 to vector<1x8x128xf32>
      %c0_14 = arith.constant 0 : index
      %c0_15 = arith.constant 0 : index
      %c0_16 = arith.constant 0 : index
      %32 = vector.load %arg5[%c0_14, %c0_15, %c0_16] : memref<1x8x128xf32, #tpu.memory_space<vmem>>, vector<1x8x128xf32>
      tpu.vector_store %arg5[%c0_14, %c0_15, %c0_16], %31 {strides = array<i32>} : memref<1x8x128xf32, #tpu.memory_space<vmem>>, vector<1x8x128xf32>,
    } else {
    }
    return
  }
  func.func @transform_0(%arg0: i32, %arg1: i32) -> (i32, i32) {
    %c1_i32 = arith.constant 1 : i32
    %0 = arith.muli %arg0, %c1_i32 : i32
    %1 = arith.addi %0, %arg1 : i32
    %c0_i32 = arith.constant 0 : i32
    %2 = arith.minsi %1, %c0_i32 : i32
    %c0_i32_0 = arith.constant 0 : i32
    %c0_i32_1 = arith.constant 0 : i32
    return %2, %c0_i32_0 : i32, i32
  }
  func.func @transform_1(%arg0: i32, %arg1: i32) -> (i32, i32) {
    %c0_i32 = arith.constant 0 : i32
    %c0_i32_0 = arith.constant 0 : i32
    %c0_i32_1 = arith.constant 0 : i32
    return %c0_i32, %c0_i32_0 : i32, i32
  }
  func.func @transform_2(%arg0: i32, %arg1: i32) -> (i32, i32) {
    %c0_i32 = arith.constant 0 : i32
    %c0_i32_0 = arith.constant 0 : i32
    %c0_i32_1 = arith.constant 0 : i32
    return %c0_i32, %c0_i32_0 : i32, i32
  }
  func.func @transform_3(%arg0: i32, %arg1: i32) -> (i32, i32, i32) {
    %c0_i32 = arith.constant 0 : i32
    %c0_i32_0 = arith.constant 0 : i32
    %c0_i32_1 = arith.constant 0 : i32
    return %arg0, %c0_i32, %c0_i32_0 : i32, i32, i32
  }
}

</mosaic_0001>

<bundles_post_ra>
// kernel: tpu_custom_call.1
= control target key start
LH: loop header
LB: loop body
LE: loop exit
PB: predicated region body
PF: predicated region fallthrough
CT: control target
= control target key end

     0   :  { %8 = vsyncpa [#allocation4], 0  ;;  %s290_s0 = inlined_call_operand.hbm [shape: f32[2,126], index: 0, kind: input, shape index: {}]   ;;  %s291_s1 = inlined_call_operand.hbm [shape: f32[1,126], index: 1, kind: input, shape index: {}]   ;;  %s292_s2 = inlined_call_operand.vmem [shape: f32[1,126], index: 2, kind: input, shape index: {}]   ;;  %s293_s3 = inlined_call_operand.hbm [shape: f32[1,8,128], index: 3, kind: output, shape index: {}]  }
   0x1   :  { %9 = vsyncpa [#allocation7], 0 }
   0x2   :  { %10 = vsyncpa [#allocation5], 0 }
   0x3   :  { %21 = vsyncadd [#allocation4], 96  ;;  %s26_s14 = sshll.u32 %s290_s0, 4  ;;  %s249_s15 = smov [#allocation3]   ;;  %s27_s14 = int_to_ptr.hbm [resolvable:$true] %s26_s14 }
   0x4   :  { %s28_s16 = sshll.u32 %s249_s15, 4  ;;  %s40_s19 = sshll.u32 %s291_s1, 4  ;;  %s29_s16 = int_to_ptr.vmem [resolvable:$true] %s28_s16  ;;  %s41_s19 = int_to_ptr.hbm [resolvable:$true] %s40_s19 }
   0x5   :  { %s250_s20 = smov 32   ;;  %s251_s21 = smov 2  }
   0x6   :  { %34 = dma.hbm_to_vmem [thread:$0]  %s27_s14, 32, %s29_s16, [#allocation4], %s250_s20, %s250_s20, %s251_s21  }
   0x7   :  { %s252_s22 = smov [#allocation6]  }
   0x8   :  { %s42_s23 = sshll.u32 %s252_s22, 4  ;;  %s43_s23 = int_to_ptr.vmem [resolvable:$true] %s42_s23 }
   0x9   :  { %45 = dma.hbm_to_vmem [thread:$0]  %s41_s19, 16, %s43_s23, [#allocation7]  }
   0xa   :  { %243 = dma.done.wait [#allocation4], 128  }
   0xb   :  { %244 = vsyncadd [#allocation4], 4294967168 }
   0xc   :  { %245 = dma.done.wait [#allocation7], 16  }
   0xd   :  { %246 = vsyncadd [#allocation7], 4294967280  ;;  %vm67_vm0 = vcmask 1024000   ;;  %v253_v0 = vmov 0.0   ;;  %v104_v1 = vlaneseq  ;;  %v69_v2 = vld [vmem:[#allocation3] sm:$0xff]  ;;  %vm112_vm2 = vcmask 1031168  }
   0xe   :  { %68 = vst.msk [vmem:[#allocation2] sm:$0x1] %vm67_vm0, %v253_v0  ;;  %v169_v3 = vld [vmem:[#allocation6] ss:$0 sm:$0xff]  ;;  %v75_v5 = vand.u32 2147483647, %v69_v2 }
   0xf   :  { %v105_v4 = vshrl.u32 %v104_v1, 7  ;;  %v170_v6 = vld [vmem:[%s292_s2] ss:$0 sm:$0xff]  ;;  %v74_v7 = vmul.f32 %v169_v3, %v69_v2  ;;  %s254_s2 = smov [#allocation8]   ;;  %s148_s27 = sshll.u32 %s293_s3, 4  ;;  %s149_s27 = int_to_ptr.hbm [resolvable:$true] %s148_s27 }
  0x10   :  { %v80_v8 = vmul.f32 %v170_v6, %v75_v5  ;;  %s146_s24 = sshll.u32 %s254_s2, 4  ;;  %s147_s24 = int_to_ptr.vmem [resolvable:$true] %s146_s24 }
  0x11   :  { %vm109_vm1 = vcmp.lt.s32.totalorder %v105_v4, 2 }
  0x12   :  { %v81_v9 = vadd.f32 %v80_v8, %v74_v7 }
  0x14   :  { %v110_v10 = vsel %vm109_vm1, %v81_v9, 0.0 }
  0x15   :  { %v113_v11 = vsel %vm112_vm2, %v110_v10, 0.0  ;;  %v111_v17 = vld [vmem:[#allocation2] sm:$0x1] }
  0x16   :  { %v114_v12 = vrot.slane %v113_v11, 4 }
  0x18   :  { %v115_v13 = vadd.f32 %v114_v12, %v113_v11 }
  0x1a   :  { %v116_v14 = vrot.slane %v115_v13, 2 }
  0x1c   :  { %v117_v15 = vadd.f32 %v116_v14, %v115_v13 }
  0x1e   :  { %v118_v16 = vrot.slane %v117_v15, 1 }
  0x20   :  { %v119_v18 = vadd.f32 %v118_v16, %v117_v15 }
  0x22   :  { %v120_v19 = vadd.f32 %v119_v18, %v111_v17 }
  0x24   :  { %122 = vst.msk [vmem:[#allocation2] sm:$0x1] %vm67_vm0, %v120_v19 }
  0x2b   :  { %v126_v20 = vld [vmem:[#allocation2] sm:$0x1] }
  0x2c   :  { %v128_v21 = vsel %vm67_vm0, %v126_v20, 0.0 }
  0x2d   :  { %129 = vadd.xlane.f32.xlu0 %v128_v21 }
  0xa0   :  { %v130_v22 = vpop.xlane.xlu0 %129 }
  0xa1   :  { %v131_v23 = vrot.slane %v130_v22, 4 }
  0xa3   :  { %v132_v24 = vadd.f32 %v131_v23, %v130_v22 }
  0xa5   :  { %v133_v25 = vrot.slane %v132_v24, 2 }
  0xa7   :  { %v134_v26 = vadd.f32 %v133_v25, %v132_v24 }
  0xa9   :  { %v135_v27 = vrot.slane %v134_v26, 1 }
  0xab   :  { %v136_v28 = vadd.f32 %v135_v27, %v134_v26 }
  0xad   :  { %161 = vpush %v136_v28 }
  0xde   :  { %s162_s28 = spop %161 }
  0xdf   :  { %s138_s29 = smul.f32 0.0046296297, %s162_s28 }
  0xe1   :  { %v139_v29 = vstv %s138_s29 }
  0xe2   :  { %140 = vst [vmem:[#allocation8] sm:$0xff] %v139_v29 }
  0xe3   :  { %151 = dma.vmem_to_hbm [thread:$0]  %s147_s24, 128, %s149_s27, [#allocation5]  }
  0xe4   :  { %247 = dma.done.wait [#allocation5], 128  }
  0xe5   :  { %248 = vsyncadd [#allocation5], 4294967168 }
  0xe6   :  { %156 = vsyncpa [#allocation4], 1 }
  0xe7   :  { %157 = vsyncpa [#allocation7], 1 }
  0xe8   :  { %158 = vsyncpa [#allocation5], 1 }

</bundles_post_ra>
